<compile_context>
chip_gen: v7x
topology: tpu7x:2x2x1
jax: 0.10.0
libtpu: 0.0.40
codegen_flags: <defaults>
</compile_context>

<pallas_src>
import functools

import numpy as np
import jax
import jax.numpy as jnp
from jax.experimental import pallas as pl
from jax.experimental.pallas import tpu as pltpu


_VMEM_LIMIT = 32 * 1024 * 1024   # well above the ~1 MiB used; < v7x 64 MiB physical


# ----------------------------------------------------------------------------
# Deterministic filterbank construction (plain numpy "parameter init" glue).
# ----------------------------------------------------------------------------
def _make_scatter_params(J, Q, T):
    sub = 2 ** J
    assert T % sub == 0, "audio_length must be divisible by 2**J"
    Tout = T // sub

    lag = np.arange(T)
    tl = ((lag + T // 2) % T) - T // 2            # signed circular lag

    def gauss(sigma):
        return np.exp(-0.5 * (tl / sigma) ** 2)

    def morlet(xi, sigma):
        g = gauss(sigma)
        carrier = np.exp(2j * np.pi * xi * tl)
        kappa = (carrier * g).sum() / g.sum()     # zero-mean correction
        psi = (carrier - kappa) * g
        return psi / (np.abs(psi).sum() + 1e-12)

    # first-order filters: Q wavelets per octave over J octaves
    N1 = J * Q
    xi1 = 0.35 * 2.0 ** (-np.arange(N1) / Q)
    psi1 = [morlet(xi1[n], 0.55 / xi1[n]) for n in range(N1)]

    # second-order filters: Q2 = 1, one wavelet per octave
    N2 = J
    xi2 = 0.35 * 2.0 ** (-np.arange(N2))
    psi2 = [morlet(xi2[n], 0.55 / xi2[n]) for n in range(N2)]

    # low-pass at scale 2**J
    phi = gauss(0.4 * sub)
    phi = phi / phi.sum()

    # circulant convolution matrices: y[t_out] = sum_t x[t] * h[(t_out - t) % T]
    idx = (np.arange(T)[None, :] - np.arange(T)[:, None]) % T   # (t_in, t_out)

    def circ(h):
        return h[idx]

    # packed wide RHS: [ all-real blocks | all-imag blocks ], each block is a
    # lane-aligned (T, T) circulant -> one MXU dot covers every filter.
    w1p = np.concatenate(
        [np.concatenate([circ(p.real) for p in psi1], axis=1),
         np.concatenate([circ(p.imag) for p in psi1], axis=1)],
        axis=1).astype(np.float32)                               # (T, 2*N1*T)

    # second-order paths: keep (n1, n2) iff n2 > j1 (Kymatio pruning rule)
    j1 = np.arange(N1) // Q
    paths = tuple(
        (int(n1), int(n2))
        for n1 in range(N1)
        for n2 in range(N2)
        if n2 > j1[n1]
    )

    N2m = N2 - 1
    if N2m > 0:
        w2p = np.concatenate(
            [np.concatenate([circ(p.real) for p in psi2[1:]], axis=1),
             np.concatenate([circ(p.imag) for p in psi2[1:]], axis=1)],
            axis=1).astype(np.float32)                           # (T, 2*N2m*T)
    else:
        w2p = None

    # low-pass conv fused with subsampling by 2**J: (T, Tout)
    phids = circ(phi)[:, ::sub].astype(np.float32)

    return w1p, w2p, phids, paths, Tout, N1, N2


# ----------------------------------------------------------------------------
# Pallas kernels (single fused invocation, everything VMEM-resident).
# ----------------------------------------------------------------------------
def _order01_body(x, w1, phi, T, N1):
    # order 0: low-pass + subsample, f32 inputs for closeness to torch f32.
    s0 = jnp.dot(x, phi, preferred_element_type=jnp.float32)         # (Bp, Tout)

    # order 1: ONE wide MXU dot over all psi1 filters (bf16 in, f32 acc).
    y1 = jnp.dot(x.astype(jnp.bfloat16), w1,
                 preferred_element_type=jnp.float32)                 # (Bp, 2*N1*T)
    nt = N1 * T
    u1 = jnp.sqrt(y1[:, :nt] ** 2 + y1[:, nt:] ** 2)                 # (Bp, N1*T) f32

    # lane-aligned repack (Bp, N1*T) -> (N1*Bp, T): static 128-lane slices
    # stacked along sublanes (no tile-crossing reshape/relayout).
    u1_t = jnp.concatenate([u1[:, n * T:(n + 1) * T] for n in range(N1)],
                           axis=0)                                   # (N1*Bp, T)

    # batched low-pass: one dot with M = N1*Bp instead of N1 dots with M = Bp.
    s1 = jnp.dot(u1_t, phi, preferred_element_type=jnp.float32)      # (N1*Bp, Tout)
    return s0, s1, u1_t


def _scatter012_kernel(x_ref, w1_ref, w2_ref, phi_ref,
                       s0_ref, s1_ref, s2_ref, *, T, N1, N2m):
    x = x_ref[...]                                  # (Bp, T)   f32
    phi = phi_ref[...]                              # (T, Tout) f32

    s0, s1, u1_t = _order01_body(x, w1_ref[...], phi, T, N1)
    s0_ref[...] = s0
    s1_ref[...] = s1

    # order 2: all psi2 filters against ALL envelopes in one dot (M = N1*Bp).
    u1_bf = u1_t.astype(jnp.bfloat16)               # cast exactly once
    y2 = jnp.dot(u1_bf, w2_ref[...],
                 preferred_element_type=jnp.float32)                 # (N1*Bp, 2*N2m*T)
    nt = N2m * T
    u2 = jnp.sqrt(y2[:, :nt] ** 2 + y2[:, nt:] ** 2)                 # (N1*Bp, N2m*T)
    u2_t = jnp.concatenate([u2[:, n * T:(n + 1) * T] for n in range(N2m)],
                           axis=0)                                   # (N2m*N1*Bp, T)
    s2_ref[...] = jnp.dot(u2_t, phi, preferred_element_type=jnp.float32)


def _scatter01_kernel(x_ref, w1_ref, phi_ref, s0_ref, s1_ref, *, T, N1):
    s0, s1, _ = _order01_body(x_ref[...], w1_ref[...], phi_ref[...], T, N1)
    s0_ref[...] = s0
    s1_ref[...] = s1


# ----------------------------------------------------------------------------
# Wrapper (mirrors Scatter.forward: scattering + reshape to (B, 1, C, Tout)).
# ----------------------------------------------------------------------------
def scatter_forward(x, J, Q):
    B, T = x.shape
    w1p, w2p, phids, paths, Tout, N1, N2 = _make_scatter_params(J, Q, T)
    N2m = N2 - 1
    P = len(paths)
    C = 1 + N1 + P                       # output_size() of the scattering

    # Pad batch (the MXU M dimension) up to the f32 sublane tile.
    Bp = int(np.ceil(max(B, 1) / 8) * 8)
    x_pad = jnp.zeros((Bp, T), jnp.float32).at[:B].set(x.astype(jnp.float32))

    w1 = jnp.asarray(w1p, jnp.bfloat16)              # (T, 2*N1*T)
    phi = jnp.asarray(phids, jnp.float32)            # (T, Tout)

    vmem = pl.BlockSpec(memory_space=pltpu.MemorySpace.VMEM)

    if P > 0 and N2m > 0:
        w2 = jnp.asarray(w2p, jnp.bfloat16)          # (T, 2*N2m*T)
        ce = pl.CostEstimate(
            flops=int(2 * Bp * T * 2 * N1 * T
                      + 2 * N1 * Bp * T * 2 * N2m * T
                      + 2 * (Bp + N1 * Bp + N2m * N1 * Bp) * T * Tout
                      + 4 * Bp * N1 * T + 4 * N1 * Bp * N2m * T),
            transcendentals=int(Bp * N1 * T + N1 * Bp * N2m * T),
            bytes_accessed=int(4 * x_pad.size + 2 * w1.size + 2 * w2.size
                               + 4 * phi.size
                               + 4 * (Bp + N1 * Bp + N2m * N1 * Bp) * Tout),
        )
        s0, s1, s2 = pl.pallas_call(
            functools.partial(_scatter012_kernel, T=T, N1=N1, N2m=N2m),
            out_shape=(jax.ShapeDtypeStruct((Bp, Tout), jnp.float32),
                       jax.ShapeDtypeStruct((N1 * Bp, Tout), jnp.float32),
                       jax.ShapeDtypeStruct((N2m * N1 * Bp, Tout), jnp.float32)),
            in_specs=[vmem, vmem, vmem, vmem],
            out_specs=(vmem, vmem, vmem),
            compiler_params=pltpu.CompilerParams(vmem_limit_bytes=_VMEM_LIMIT),
            cost_estimate=ce,
        )(x_pad, w1, w2, phi)

        # select valid (j2 > j1) paths in n1-major order with ONE gather
        grp = jnp.asarray([(n2 - 1) * N1 + n1 for (n1, n2) in paths], jnp.int32)
        s2_sel = s2.reshape(N2m * N1, Bp, Tout)[grp][:, :B]   # (P, B, Tout)
        s1_b = s1.reshape(N1, Bp, Tout)[:, :B]                # (N1, B, Tout)
        out = jnp.concatenate(
            [s0[:B, None],
             jnp.transpose(s1_b, (1, 0, 2)),
             jnp.transpose(s2_sel, (1, 0, 2))], axis=1)        # (B, C, Tout)
    else:
        ce = pl.CostEstimate(
            flops=int(2 * Bp * T * 2 * N1 * T
                      + 2 * (Bp + N1 * Bp) * T * Tout + 4 * Bp * N1 * T),
            transcendentals=int(Bp * N1 * T),
            bytes_accessed=int(4 * x_pad.size + 2 * w1.size + 4 * phi.size
                               + 4 * (Bp + N1 * Bp) * Tout),
        )
        s0, s1 = pl.pallas_call(
            functools.partial(_scatter01_kernel, T=T, N1=N1),
            out_shape=(jax.ShapeDtypeStruct((Bp, Tout), jnp.float32),
                       jax.ShapeDtypeStruct((N1 * Bp, Tout), jnp.float32)),
            in_specs=[vmem, vmem, vmem],
            out_specs=(vmem, vmem),
            compiler_params=pltpu.CompilerParams(vmem_limit_bytes=_VMEM_LIMIT),
            cost_estimate=ce,
        )(x_pad, w1, phi)
        s1_b = s1.reshape(N1, Bp, Tout)[:, :B]
        out = jnp.concatenate(
            [s0[:B, None], jnp.transpose(s1_b, (1, 0, 2))], axis=1)

    # torch.reshape(x, (x.shape[0], 1, x.shape[1], x.shape[2]))
    return out.reshape(B, 1, C, Tout)


if __name__ == "__main__":
    J, Q = 3, 2
    B, T = 2, 128                         # audio_length = 128

    key = jax.random.PRNGKey(0)
    x = jax.random.normal(key, (B, T), dtype=jnp.float32)

    y = scatter_forward(x, J, Q)
    jax.block_until_ready(y)

    # sanity: shape is (B, 1, C, T // 2**J) with C = 1 + J*Q + #paths
    assert y.ndim == 4 and y.shape[0] == B and y.shape[1] == 1
    assert y.shape[3] == T // (2 ** J)
    assert bool(jnp.all(jnp.isfinite(y)))

    print("KERNEL_OK")
</pallas_src>

<mosaic_0001>
module attributes {stable_mosaic.version = 11 : i64} {
  func.func @_scatter012_kernel(%arg0: memref<8x128xf32, #tpu.memory_space<vmem>>, %arg1: memref<128x1536xbf16, #tpu.memory_space<vmem>>, %arg2: memref<128x512xbf16, #tpu.memory_space<vmem>>, %arg3: memref<128x16xf32, #tpu.memory_space<vmem>>, %arg4: memref<8x16xf32, #tpu.memory_space<vmem>>, %arg5: memref<48x16xf32, #tpu.memory_space<vmem>>, %arg6: memref<96x16xf32, #tpu.memory_space<vmem>>) attributes {dimension_semantics = [], scalar_prefetch = 0 : i64, scratch_operands = 0 : i64, tpu.core_type = #tpu.core_type<tc>} {
    %c0 = arith.constant 0 : index
    %c0_0 = arith.constant 0 : index
    %0 = vector.load %arg0[%c0, %c0_0] : memref<8x128xf32, #tpu.memory_space<vmem>>, vector<8x128xf32>
    %c0_1 = arith.constant 0 : index
    %c0_2 = arith.constant 0 : index
    %1 = vector.load %arg3[%c0_1, %c0_2] : memref<128x16xf32, #tpu.memory_space<vmem>>, vector<128x16xf32>
    %c0_3 = arith.constant 0 : index
    %c0_4 = arith.constant 0 : index
    %2 = vector.load %arg1[%c0_3, %c0_4] : memref<128x1536xbf16, #tpu.memory_space<vmem>>, vector<128x1536xbf16>
    %cst = arith.constant dense<0.000000e+00> : vector<8x16xf32>
    %3 = tpu.matmul %0, %1, %cst {dimension_numbers = #tpu.dot_dimension_numbers<[1], [0], [0], [1], [0, 0, 1, 1], [], []>} : vector<8x128xf32>, vector<128x16xf32>, vector<8x16xf32> -> vector<8x16xf32>
    %4 = arith.truncf %0 : vector<8x128xf32> to vector<8x128xbf16>
    %cst_5 = arith.constant dense<0.000000e+00> : vector<8x1536xf32>
    %5 = tpu.matmul %4, %2, %cst_5 {dimension_numbers = #tpu.dot_dimension_numbers<[1], [0], [0], [1], [0, 0, 1, 1], [], []>} : vector<8x128xbf16>, vector<128x1536xbf16>, vector<8x1536xf32> -> vector<8x1536xf32>
    %6 = vector.extract_strided_slice %5 {offsets = [0, 0], sizes = [8, 768], strides = [1, 1]} : vector<8x1536xf32> to vector<8x768xf32>
    %7 = arith.mulf %6, %6 : vector<8x768xf32>
    %8 = vector.extract_strided_slice %5 {offsets = [0, 768], sizes = [8, 768], strides = [1, 1]} : vector<8x1536xf32> to vector<8x768xf32>
    %9 = arith.mulf %8, %8 : vector<8x768xf32>
    %10 = arith.addf %7, %9 : vector<8x768xf32>
    %11 = math.sqrt %10 : vector<8x768xf32>
    %12 = vector.extract_strided_slice %11 {offsets = [0, 0], sizes = [8, 128], strides = [1, 1]} : vector<8x768xf32> to vector<8x128xf32>
    %13 = vector.extract_strided_slice %11 {offsets = [0, 128], sizes = [8, 128], strides = [1, 1]} : vector<8x768xf32> to vector<8x128xf32>
    %14 = vector.extract_strided_slice %11 {offsets = [0, 256], sizes = [8, 128], strides = [1, 1]} : vector<8x768xf32> to vector<8x128xf32>
    %15 = vector.extract_strided_slice %11 {offsets = [0, 384], sizes = [8, 128], strides = [1, 1]} : vector<8x768xf32> to vector<8x128xf32>
    %16 = vector.extract_strided_slice %11 {offsets = [0, 512], sizes = [8, 128], strides = [1, 1]} : vector<8x768xf32> to vector<8x128xf32>
    %17 = vector.extract_strided_slice %11 {offsets = [0, 640], sizes = [8, 128], strides = [1, 1]} : vector<8x768xf32> to vector<8x128xf32>
    %18 = tpu.concatenate %12, %13, %14, %15, %16, %17 in 0 : vector<8x128xf32>, vector<8x128xf32>, vector<8x128xf32>, vector<8x128xf32>, vector<8x128xf32>, vector<8x128xf32> -> vector<48x128xf32>
    %cst_6 = arith.constant dense<0.000000e+00> : vector<48x16xf32>
    %19 = tpu.matmul %18, %1, %cst_6 {dimension_numbers = #tpu.dot_dimension_numbers<[1], [0], [0], [1], [0, 0, 1, 1], [], []>} : vector<48x128xf32>, vector<128x16xf32>, vector<48x16xf32> -> vector<48x16xf32>
    %c0_7 = arith.constant 0 : index
    %c0_8 = arith.constant 0 : index
    %20 = vector.load %arg4[%c0_7, %c0_8] : memref<8x16xf32, #tpu.memory_space<vmem>>, vector<8x16xf32>
    tpu.vector_store %arg4[%c0_7, %c0_8], %3 {strides = array<i32>} : memref<8x16xf32, #tpu.memory_space<vmem>>, vector<8x16xf32>,
    %c0_9 = arith.constant 0 : index
    %c0_10 = arith.constant 0 : index
    %21 = vector.load %arg5[%c0_9, %c0_10] : memref<48x16xf32, #tpu.memory_space<vmem>>, vector<48x16xf32>
    tpu.vector_store %arg5[%c0_9, %c0_10], %19 {strides = array<i32>} : memref<48x16xf32, #tpu.memory_space<vmem>>, vector<48x16xf32>,
    %22 = arith.truncf %18 : vector<48x128xf32> to vector<48x128xbf16>
    %c0_11 = arith.constant 0 : index
    %c0_12 = arith.constant 0 : index
    %23 = vector.load %arg2[%c0_11, %c0_12] : memref<128x512xbf16, #tpu.memory_space<vmem>>, vector<128x512xbf16>
    %cst_13 = arith.constant dense<0.000000e+00> : vector<48x512xf32>
    %24 = tpu.matmul %22, %23, %cst_13 {dimension_numbers = #tpu.dot_dimension_numbers<[1], [0], [0], [1], [0, 0, 1, 1], [], []>} : vector<48x128xbf16>, vector<128x512xbf16>, vector<48x512xf32> -> vector<48x512xf32>
    %25 = vector.extract_strided_slice %24 {offsets = [0, 0], sizes = [48, 256], strides = [1, 1]} : vector<48x512xf32> to vector<48x256xf32>
    %26 = arith.mulf %25, %25 : vector<48x256xf32>
    %27 = vector.extract_strided_slice %24 {offsets = [0, 256], sizes = [48, 256], strides = [1, 1]} : vector<48x512xf32> to vector<48x256xf32>
    %28 = arith.mulf %27, %27 : vector<48x256xf32>
    %29 = arith.addf %26, %28 : vector<48x256xf32>
    %30 = math.sqrt %29 : vector<48x256xf32>
    %31 = vector.extract_strided_slice %30 {offsets = [0, 0], sizes = [48, 128], strides = [1, 1]} : vector<48x256xf32> to vector<48x128xf32>
    %32 = vector.extract_strided_slice %30 {offsets = [0, 128], sizes = [48, 128], strides = [1, 1]} : vector<48x256xf32> to vector<48x128xf32>
    %33 = tpu.concatenate %31, %32 in 0 : vector<48x128xf32>, vector<48x128xf32> -> vector<96x128xf32>
    %cst_14 = arith.constant dense<0.000000e+00> : vector<96x16xf32>
    %34 = tpu.matmul %33, %1, %cst_14 {dimension_numbers = #tpu.dot_dimension_numbers<[1], [0], [0], [1], [0, 0, 1, 1], [], []>} : vector<96x128xf32>, vector<128x16xf32>, vector<96x16xf32> -> vector<96x16xf32>
    %c0_15 = arith.constant 0 : index
    %c0_16 = arith.constant 0 : index
    %35 = vector.load %arg6[%c0_15, %c0_16] : memref<96x16xf32, #tpu.memory_space<vmem>>, vector<96x16xf32>
    tpu.vector_store %arg6[%c0_15, %c0_16], %34 {strides = array<i32>} : memref<96x16xf32, #tpu.memory_space<vmem>>, vector<96x16xf32>,
    return
  }
}

</mosaic_0001>

<bundles_post_ra>
// kernel: tpu_custom_call.1
= control target key start
LH: loop header
LB: loop body
LE: loop exit
PB: predicated region body
PF: predicated region fallthrough
CT: control target
= control target key end

     0   :  { %12 = vsyncpa [#allocation3], 0  ;;  %s2897_s0 = inlined_call_operand.vmem [shape: f32[8,128], index: 0, kind: input, shape index: {}]   ;;  %s2898_s1 = inlined_call_operand.hbm [shape: bf16[128,1536], index: 1, kind: input, shape index: {}]   ;;  %s2899_s2 = inlined_call_operand.hbm [shape: bf16[128,512], index: 2, kind: input, shape index: {}]   ;;  %s2900_s3 = inlined_call_operand.vmem [shape: f32[128,16], index: 3, kind: input, shape index: {}]   ;;  %s2901_s4 = inlined_call_operand.hbm [shape: f32[8,16], index: 4, kind: output, shape index: {0}]   ;;  %s2902_s5 = inlined_call_operand.vmem [shape: f32[48,16], index: 5, kind: output, shape index: {1}]   ;;  %s2903_s6 = inlined_call_operand.vmem [shape: f32[96,16], index: 6, kind: output, shape index: {2}]  }
   0x1   :  { %13 = vsyncpa [#allocation6], 0 }
   0x2   :  { %14 = vsyncpa [#allocation4], 0  ;;  %s2461_s21 = smov [#allocation2]   ;;  %s2389_s25 = scalar_lea.hbm %s2898_s1, 12288 }
   0x3   :  { %s22_s22 = sshll.u32 %s2461_s21, 4  ;;  %p2390_p0 = scmp.ne.s32.totalorder %s2898_s1, %s2389_s25  ;;  %s23_s22 = int_to_ptr.vmem [resolvable:$true] %s22_s22 }
   0x4   :  { %p2393_p1 = scmp.lt.u32.totalorder %s2389_s25, %s2898_s1 }
   0x6   :  { %p2395_p2 = pnand %p2393_p1, %p2390_p0 }
   0x8   :  { %2398 = shalt.err (!%p2395_p2)
}
   0x9   :  { %s2399_s30 = scalar_lea.vmem %s23_s22, 12288  ;;  %p2404_p4 = scmp.lt.s32.totalorder %s23_s22, %s23_s22 }
   0xa   :  { %p2400_p3 = scmp.ne.s32.totalorder %s23_s22, %s2399_s30  ;;  %p2405_p5 = scmp.lt.s32.totalorder %s2399_s30, %s2399_s30 }
   0xc   :  { %p2406_p6 = por %p2405_p5, %p2404_p4 }
   0xe   :  { %p2407_p7 = pnand %p2406_p6, %p2400_p3 }
  0x10   :  { %2410 = shalt.err (!%p2407_p7)
}
  0x11   :  { %s2462_s7 = smov 768   ;;  %s2463_s8 = smov 48  }
  0x12   :  { %28 = dma.hbm_to_vmem [thread:$0]  %s2898_s1, 12288, %s23_s22, [#allocation3], %s2462_s7, %s2462_s7, %s2463_s8  }
  0x13   :  { %s2464_s11 = smov [#allocation5]   ;;  %s2411_s15 = scalar_lea.hbm %s2899_s2, 4096 }
  0x14   :  { %s34_s12 = sshll.u32 %s2464_s11, 4  ;;  %p2412_p8 = scmp.ne.s32.totalorder %s2899_s2, %s2411_s15  ;;  %s35_s12 = int_to_ptr.vmem [resolvable:$true] %s34_s12 }
  0x15   :  { %p2415_p9 = scmp.lt.u32.totalorder %s2411_s15, %s2899_s2 }
  0x17   :  { %p2417_p10 = pnand %p2415_p9, %p2412_p8 }
  0x19   :  { %2420 = shalt.err (!%p2417_p10)
}
  0x1a   :  { %s2421_s20 = scalar_lea.vmem %s35_s12, 4096  ;;  %p2426_p12 = scmp.lt.s32.totalorder %s35_s12, %s35_s12 }
  0x1b   :  { %p2422_p11 = scmp.ne.s32.totalorder %s35_s12, %s2421_s20  ;;  %p2427_p13 = scmp.lt.s32.totalorder %s2421_s20, %s2421_s20 }
  0x1d   :  { %p2428_p0 = por %p2427_p13, %p2426_p12 }
  0x1f   :  { %p2429_p1 = pnand %p2428_p0, %p2422_p11 }
  0x21   :  { %2432 = shalt.err (!%p2429_p1)
}
  0x22   :  { %s2465_s1 = smov 256   ;;  %s2466_s21 = smov 16  }
  0x23   :  { %40 = dma.hbm_to_vmem [thread:$0]  %s2899_s2, 4096, %s35_s12, [#allocation6], %s2465_s1, %s2465_s1, %s2466_s21  }
  0x24   :  { %2455 = dma.done.wait [#allocation3], 12288  }
  0x25   :  { %2456 = vsyncadd [#allocation3], 4294955008 }
  0x26   :  { %2457 = dma.done.wait [#allocation6], 4096  }
  0x27   :  { %2458 = vsyncadd [#allocation6], 4294963200  ;;  %v2467_v0 = vmov 0.0|0.0   ;;  %vm2468_vm0 = vmmov 0   ;;  %v2469_v1 = vmov 0.0   ;;  %v2470_v2 = vmov 0  }
  0x28   :  { %2046 = vmatprep.subr.bf16.mxu0 %v2467_v0  ;;  %1952 = vmatprep.mubr.msk.f32.mxu0 %vm2468_vm0, %v2469_v1  ;;  %v51_v3 = vld [vmem:[%s2900_s3] sm:$0xff]  ;;  %v52_v4 = vld [vmem:[%s2900_s3 + $0x8] sm:$0xff]  ;;  %v53_v8 = vld [vmem:[%s2900_s3 + $0x10] sm:$0xff]  ;;  %vm1115_vm1 = vcmask 130048  }
  0x29   :  { %746 = vmatprep.mubr.bf16.mxu1 %v2470_v2  ;;  %v2539_v5 = vpack.c.bf16 %v52_v4, %v51_v3  ;;  %v2161_v6 = vld [vmem:[#allocation2 + $0x4] ss:$48 sps:$4 sm:$0xff]   ;;  %v2163_v7 = vld [vmem:[#allocation2] ss:$48 sps:$4 sm:$0xff]   ;;  %v54_v9 = vld [vmem:[%s2900_s3 + $0x18] sm:$0xff] }
  0x2a   :  { %714 = vmatprep.subr.bf16.mxu1 %v2161_v6  ;;  %v2548_v10 = vpack.c.bf16 %v54_v9, %v53_v8  ;;  %v2164_v11 = vld [vmem:[#allocation2 + $0x64] ss:$48 sps:$4 sm:$0xff]   ;;  %v2166_v12 = vld [vmem:[#allocation2 + $0x60] ss:$48 sps:$4 sm:$0xff]   ;;  %v56_v14 = vld [vmem:[%s2900_s3 + $0x28] sm:$0xff] }
  0x2b   :  { %2048 = vmatpush3.bf16.msra.mxu0 %v2539_v5  ;;  %715 = vmatpush1.bf16.msra.mxu1 %v2163_v7  ;;  %v55_v13 = vld [vmem:[%s2900_s3 + $0x20] sm:$0xff]  ;;  %v57_v18 = vld [vmem:[%s2900_s3 + $0x30] sm:$0xff]  ;;  %v58_v19 = vld [vmem:[%s2900_s3 + $0x38] sm:$0xff] }
  0x2c   :  { %2049 = vmatprep.subr.bf16.mxu0 %v2467_v0  ;;  %716 = vmatprep.subr.bf16.mxu1 %v2164_v11  ;;  %v2167_v15 = vld [vmem:[#allocation2 + $0xc4] ss:$48 sps:$4 sm:$0xff]   ;;  %v2558_v16 = vpack.c.bf16 %v56_v14, %v55_v13  ;;  %v2169_v17 = vld [vmem:[#allocation2 + $0xc0] ss:$48 sps:$4 sm:$0xff]   ;;  %v2568_v21 = vpack.c.bf16 %v58_v19, %v57_v18  ;;  %v60_v24 = vld [vmem:[%s2900_s3 + $0x48] sm:$0xff] }
  0x2d   :  { %v2170_v20 = vld [vmem:[#allocation2 + $0x124] ss:$48 sps:$4 sm:$0xff]   ;;  %v2172_v22 = vld [vmem:[#allocation2 + $0x120] ss:$48 sps:$4 sm:$0xff]   ;;  %v62_v29 = vld [vmem:[%s2900_s3 + $0x58] sm:$0xff] }
  0x2e   :  { %v59_v23 = vld [vmem:[%s2900_s3 + $0x40] sm:$0xff]  ;;  %v61_v28 = vld [vmem:[%s2900_s3 + $0x50] sm:$0xff]  ;;  %v64_v34 = vld [vmem:[%s2900_s3 + $0x68] sm:$0xff] }
  0x2f   :  { %2051 = vmatpush3.bf16.msra.mxu0 %v2548_v10  ;;  %717 = vmatpush1.bf16.msra.mxu1 %v2166_v12  ;;  %v2173_v25 = vld [vmem:[#allocation2 + $0x184] ss:$48 sps:$4 sm:$0xff]   ;;  %v2578_v26 = vpack.c.bf16 %v60_v24, %v59_v23  ;;  %v2175_v27 = vld [vmem:[#allocation2 + $0x180] ss:$48 sps:$4 sm:$0xff]   ;;  %v2588_v32 = vpack.c.bf16 %v62_v29, %v61_v28  ;;  %v66_v39 = vld [vmem:[%s2900_s3 + $0x78] sm:$0xff] }
  0x30   :  { %2052 = vmatprep.subr.bf16.mxu0 %v2467_v0  ;;  %718 = vmatprep.subr.bf16.mxu1 %v2167_v15  ;;  %v2176_v30 = vld [vmem:[#allocation2 + $0x1e4] ss:$48 sps:$4 sm:$0xff]   ;;  %v2178_v31 = vld [vmem:[#allocation2 + $0x1e0] ss:$48 sps:$4 sm:$0xff]   ;;  %v2187_v44 = vld [vmem:[#allocation2 + $0xc] ss:$48 sps:$4 sm:$0xff]  }
  0x31   :  { %v63_v33 = vld [vmem:[%s2900_s3 + $0x60] sm:$0xff]  ;;  %v65_v38 = vld [vmem:[%s2900_s3 + $0x70] sm:$0xff]  ;;  %v2185_v46 = vld [vmem:[#allocation2 + $0x8] ss:$48 sps:$4 sm:$0xff]  }
  0x32   :  { %v2179_v35 = vld [vmem:[#allocation2 + $0x244] ss:$48 sps:$4 sm:$0xff]   ;;  %v2181_v36 = vld [vmem:[#allocation2 + $0x240] ss:$48 sps:$4 sm:$0xff]   ;;  %v2598_v37 = vpack.c.bf16 %v64_v34, %v63_v33  ;;  %v2608_v42 = vpack.c.bf16 %v66_v39, %v65_v38  ;;  %v2193_v49 = vld [vmem:[#allocation2 + $0x6c] ss:$48 sps:$4 sm:$0xff]  }
  0x33   :  { %2054 = vmatpush3.bf16.msra.mxu0 %v2558_v16  ;;  %719 = vmatpush1.bf16.msra.mxu1 %v2169_v17  ;;  %v2182_v40 = vld [vmem:[#allocation2 + $0x2a4] ss:$48 sps:$4 sm:$0xff]   ;;  %v2184_v41 = vld [vmem:[#allocation2 + $0x2a0] ss:$48 sps:$4 sm:$0xff]   ;;  %v2191_v51 = vld [vmem:[#allocation2 + $0x68] ss:$48 sps:$4 sm:$0xff]  }
  0x34   :  { %2055 = vmatprep.subr.bf16.mxu0 %v2467_v0  ;;  %720 = vmatprep.subr.bf16.mxu1 %v2170_v20  ;;  %v50_v43 = vld [vmem:[%s2897_s0] sm:$0xff]  ;;  %v2199_v53 = vld [vmem:[#allocation2 + $0xcc] ss:$48 sps:$4 sm:$0xff]   ;;  %v2197_v55 = vld [vmem:[#allocation2 + $0xc8] ss:$48 sps:$4 sm:$0xff]  }
  0x35   :  { %v2190_v45 = vld [vmem:[#allocation2 + $0x14] ss:$48 sps:$4 sm:$0xff]   ;;  %v2615_v47 = vpack.c.bf16 %v50_v43, %v50_v43  ;;  %v2188_v48 = vld [vmem:[#allocation2 + $0x10] ss:$48 sps:$4 sm:$0xff]   ;;  %v2205_v57 = vld [vmem:[#allocation2 + $0x12c] ss:$48 sps:$4 sm:$0xff]  }
  0x36   :  { %v2196_v50 = vld [vmem:[#allocation2 + $0x74] ss:$48 sps:$4 sm:$0xff]   ;;  %v2194_v52 = vld [vmem:[#allocation2 + $0x70] ss:$48 sps:$4 sm:$0xff]   ;;  %v2203_v59 = vld [vmem:[#allocation2 + $0x128] ss:$48 sps:$4 sm:$0xff]  }
  0x37   :  { %2057 = vmatpush3.bf16.msra.mxu0 %v2568_v21  ;;  %721 = vmatpush1.bf16.msra.mxu1 %v2172_v22  ;;  %v2202_v54 = vld [vmem:[#allocation2 + $0xd4] ss:$48 sps:$4 sm:$0xff]   ;;  %v2200_v56 = vld [vmem:[#allocation2 + $0xd0] ss:$48 sps:$4 sm:$0xff]   ;;  %v2211_v61 = vld [vmem:[#allocation2 + $0x18c] ss:$48 sps:$4 sm:$0xff]  }
  0x38   :  { %2058 = vmatprep.subr.bf16.mxu0 %v2467_v0  ;;  %722 = vmatprep.subr.bf16.mxu1 %v2173_v25  ;;  %v2208_v58 = vld [vmem:[#allocation2 + $0x134] ss:$48 sps:$4 sm:$0xff]   ;;  %v2206_v60 = vld [vmem:[#allocation2 + $0x130] ss:$48 sps:$4 sm:$0xff]   ;;  %v2209_v63 = vld [vmem:[#allocation2 + $0x188] ss:$48 sps:$4 sm:$0xff]  }
  0x39   :  { %v2214_v62 = vld [vmem:[#allocation2 + $0x194] ss:$48 sps:$4 sm:$0xff]   ;;  %v2217_v1 = vld [vmem:[#allocation2 + $0x1ec] ss:$48 sps:$4 sm:$0xff]   ;;  %v2215_v4 = vld [vmem:[#allocation2 + $0x1e8] ss:$48 sps:$4 sm:$0xff]  }
  0x3a   :  { %v2220_v3 = vld [vmem:[#allocation2 + $0x1f4] ss:$48 sps:$4 sm:$0xff]   ;;  %v2218_v6 = vld [vmem:[#allocation2 + $0x1f0] ss:$48 sps:$4 sm:$0xff]   ;;  %v2223_v7 = vld [vmem:[#allocation2 + $0x24c] ss:$48 sps:$4 sm:$0xff]  }
  0x3b   :  { %2060 = vmatpush3.bf16.msra.mxu0 %v2578_v26  ;;  %723 = vmatpush1.bf16.msra.mxu1 %v2175_v27  ;;  %v2226_v8 = vld [vmem:[#allocation2 + $0x254] ss:$48 sps:$4 sm:$0xff]   ;;  %v2221_v9 = vld [vmem:[#allocation2 + $0x248] ss:$48 sps:$4 sm:$0xff]   ;;  %v2224_v11 = vld [vmem:[#allocation2 + $0x250] ss:$48 sps:$4 sm:$0xff]  }
  0x3c   :  { %2061 = vmatprep.subr.bf16.mxu0 %v2467_v0  ;;  %724 = vmatprep.subr.bf16.mxu1 %v2176_v30  ;;  %v2229_v12 = vld [vmem:[#allocation2 + $0x2ac] ss:$48 sps:$4 sm:$0xff]   ;;  %v2232_v13 = vld [vmem:[#allocation2 + $0x2b4] ss:$48 sps:$4 sm:$0xff]   ;;  %v2227_v14 = vld [vmem:[#allocation2 + $0x2a8] ss:$48 sps:$4 sm:$0xff]  }
  0x3d   :  { %v2230_v15 = vld [vmem:[#allocation2 + $0x2b0] ss:$48 sps:$4 sm:$0xff]   ;;  %v2235_v17 = vld [vmem:[#allocation2 + $0x1c] ss:$48 sps:$4 sm:$0xff]   ;;  %v2238_v18 = vld [vmem:[#allocation2 + $0x24] ss:$48 sps:$4 sm:$0xff]  }
  0x3e   :  { %v2233_v19 = vld [vmem:[#allocation2 + $0x18] ss:$48 sps:$4 sm:$0xff]   ;;  %v2236_v20 = vld [vmem:[#allocation2 + $0x20] ss:$48 sps:$4 sm:$0xff]   ;;  %v2241_v22 = vld [vmem:[#allocation2 + $0x7c] ss:$48 sps:$4 sm:$0xff]  }
  0x3f   :  { %2063 = vmatpush3.bf16.msra.mxu0 %v2588_v32  ;;  %725 = vmatpush1.bf16.msra.mxu1 %v2178_v31  ;;  %v2244_v23 = vld [vmem:[#allocation2 + $0x84] ss:$48 sps:$4 sm:$0xff]   ;;  %v2239_v24 = vld [vmem:[#allocation2 + $0x78] ss:$48 sps:$4 sm:$0xff]   ;;  %v2242_v25 = vld [vmem:[#allocation2 + $0x80] ss:$48 sps:$4 sm:$0xff]  }
  0x40   :  { %2064 = vmatprep.subr.bf16.mxu0 %v2467_v0  ;;  %726 = vmatprep.subr.bf16.mxu1 %v2179_v35  ;;  %v2247_v27 = vld [vmem:[#allocation2 + $0xdc] ss:$48 sps:$4 sm:$0xff]   ;;  %v2245_v28 = vld [vmem:[#allocation2 + $0xd8] ss:$48 sps:$4 sm:$0xff]   ;;  %v2250_v29 = vld [vmem:[#allocation2 + $0xe4] ss:$48 sps:$4 sm:$0xff]  }
  0x41   :  { %v2248_v30 = vld [vmem:[#allocation2 + $0xe0] ss:$48 sps:$4 sm:$0xff]   ;;  %v2253_v31 = vld [vmem:[#allocation2 + $0x13c] ss:$48 sps:$4 sm:$0xff]   ;;  %v2256_v33 = vld [vmem:[#allocation2 + $0x144] ss:$48 sps:$4 sm:$0xff]  }
  0x42   :  { %v2251_v34 = vld [vmem:[#allocation2 + $0x138] ss:$48 sps:$4 sm:$0xff]   ;;  %v2254_v35 = vld [vmem:[#allocation2 + $0x140] ss:$48 sps:$4 sm:$0xff]   ;;  %v2262_v38 = vld [vmem:[#allocation2 + $0x1a4] ss:$48 sps:$4 sm:$0xff]  }
  0x43   :  { %2066 = vmatpush3.bf16.msra.mxu0 %v2598_v37  ;;  %727 = vmatpush1.bf16.msra.mxu1 %v2181_v36  ;;  %v2259_v36 = vld [vmem:[#allocation2 + $0x19c] ss:$48 sps:$4 sm:$0xff]   ;;  %v2257_v39 = vld [vmem:[#allocation2 + $0x198] ss:$48 sps:$4 sm:$0xff]  }
  0x44   :  { %2067 = vmatprep.subr.bf16.mxu0 %v2467_v0  ;;  %728 = vmatprep.subr.bf16.mxu1 %v2182_v40  ;;  %v2212_v0 = vld [vmem:[#allocation2 + $0x190] ss:$48 sps:$4 sm:$0xff]  }
  0x45   :  { %v2260_v40 = vld [vmem:[#allocation2 + $0x1a0] ss:$48 sps:$4 sm:$0xff]  }
  0x47   :  { %2069 = vmatpush3.bf16.msra.mxu0 %v2608_v42  ;;  %729 = vmatpush1.bf16.msra.mxu1 %v2184_v41  ;;  %v2265_v41 = vld [vmem:[#allocation2 + $0x1fc] ss:$48 sps:$4 sm:$0xff]  }
  0x48   :  { %755 = vmatprep.subr.bf16.mxu0 %v2187_v44  ;;  %796 = vmatprep.subr.bf16.mxu1 %v2190_v45  ;;  %v2263_v44 = vld [vmem:[#allocation2 + $0x1f8] ss:$48 sps:$4 sm:$0xff]   ;;  %v2266_v45 = vld [vmem:[#allocation2 + $0x200] ss:$48 sps:$4 sm:$0xff]  }
  0x4a   :  { %1953 = vmatmul.mubr.f32.vlgmr.msra.gmra.mrb[0].mxu0 %v50_v43  ;;  %747 = vmatmul.mubr.bf16.vlgmr.msra.gmra.mrb[0].mxu1 %v2615_v47  ;;  %v2268_v43 = vld [vmem:[#allocation2 + $0x204] ss:$48 sps:$4 sm:$0xff]  }
  0x4b   :  { %756 = vmatpush1.bf16.msra.mxu0 %v2185_v46  ;;  %797 = vmatpush1.bf16.msra.mxu1 %v2188_v48  ;;  %v2271_v46 = vld [vmem:[#allocation2 + $0x25c] ss:$48 sps:$4 sm:$0xff]   ;;  %v2274_v48 = vld [vmem:[#allocation2 + $0x264] ss:$48 sps:$4 sm:$0xff]  }
  0x4c   :  { %757 = vmatprep.subr.bf16.mxu0 %v2193_v49  ;;  %798 = vmatprep.subr.bf16.mxu1 %v2196_v50  ;;  %v2269_v49 = vld [vmem:[#allocation2 + $0x258] ss:$48 sps:$4 sm:$0xff]   ;;  %v2272_v50 = vld [vmem:[#allocation2 + $0x260] ss:$48 sps:$4 sm:$0xff]  }
  0x4d   :  { %787 = vmatprep.mubr.bf16.mxu0 %v2470_v2  ;;  %828 = vmatprep.mubr.bf16.mxu1 %v2470_v2 }
  0x4f   :  { %758 = vmatpush1.bf16.msra.mxu0 %v2191_v51  ;;  %799 = vmatpush1.bf16.msra.mxu1 %v2194_v52  ;;  %v2277_v51 = vld [vmem:[#allocation2 + $0x2bc] ss:$48 sps:$4 sm:$0xff]   ;;  %v2280_v52 = vld [vmem:[#allocation2 + $0x2c4] ss:$48 sps:$4 sm:$0xff]  }
  0x50   :  { %759 = vmatprep.subr.bf16.mxu0 %v2199_v53  ;;  %800 = vmatprep.subr.bf16.mxu1 %v2202_v54  ;;  %v2275_v53 = vld [vmem:[#allocation2 + $0x2b8] ss:$48 sps:$4 sm:$0xff]   ;;  %v2278_v54 = vld [vmem:[#allocation2 + $0x2c0] ss:$48 sps:$4 sm:$0xff]  }
  0x53   :  { %760 = vmatpush1.bf16.msra.mxu0 %v2197_v55  ;;  %801 = vmatpush1.bf16.msra.mxu1 %v2200_v56  ;;  %v2283_v55 = vld [vmem:[#allocation2 + $0x2c] ss:$48 sps:$4 sm:$0xff]   ;;  %v2281_v56 = vld [vmem:[#allocation2 + $0x28] ss:$48 sps:$4 sm:$0xff]  }
  0x54   :  { %761 = vmatprep.subr.bf16.mxu0 %v2205_v57  ;;  %802 = vmatprep.subr.bf16.mxu1 %v2208_v58  ;;  %v2286_v57 = vld [vmem:[#allocation2 + $0x8c] ss:$48 sps:$4 sm:$0xff]   ;;  %v2284_v58 = vld [vmem:[#allocation2 + $0x88] ss:$48 sps:$4 sm:$0xff]  }
  0x57   :  { %762 = vmatpush1.bf16.msra.mxu0 %v2203_v59  ;;  %803 = vmatpush1.bf16.msra.mxu1 %v2206_v60  ;;  %v2289_v59 = vld [vmem:[#allocation2 + $0xec] ss:$48 sps:$4 sm:$0xff]   ;;  %v2287_v60 = vld [vmem:[#allocation2 + $0xe8] ss:$48 sps:$4 sm:$0xff]  }
  0x58   :  { %763 = vmatprep.subr.bf16.mxu0 %v2211_v61  ;;  %804 = vmatprep.subr.bf16.mxu1 %v2214_v62  ;;  %v2292_v61 = vld [vmem:[#allocation2 + $0x14c] ss:$48 sps:$4 sm:$0xff]   ;;  %v2290_v62 = vld [vmem:[#allocation2 + $0x148] ss:$48 sps:$4 sm:$0xff]  }
  0x5b   :  { %764 = vmatpush1.bf16.msra.mxu0 %v2209_v63  ;;  %805 = vmatpush1.bf16.msra.mxu1 %v2212_v0  ;;  %v2295_v63 = vld [vmem:[#allocation2 + $0x1ac] ss:$48 sps:$4 sm:$0xff]   ;;  %v2293_v0 = vld [vmem:[#allocation2 + $0x1a8] ss:$48 sps:$4 sm:$0xff]  }
  0x5c   :  { %765 = vmatprep.subr.bf16.mxu0 %v2217_v1  ;;  %806 = vmatprep.subr.bf16.mxu1 %v2220_v3  ;;  %v2298_v1 = vld [vmem:[#allocation2 + $0x20c] ss:$48 sps:$4 sm:$0xff]   ;;  %v2296_v3 = vld [vmem:[#allocation2 + $0x208] ss:$48 sps:$4 sm:$0xff]  }
  0x5f   :  { %766 = vmatpush1.bf16.msra.mxu0 %v2215_v4  ;;  %807 = vmatpush1.bf16.msra.mxu1 %v2218_v6  ;;  %v2301_v4 = vld [vmem:[#allocation2 + $0x26c] ss:$48 sps:$4 sm:$0xff]   ;;  %v2299_v6 = vld [vmem:[#allocation2 + $0x268] ss:$48 sps:$4 sm:$0xff]  }
  0x60   :  { %767 = vmatprep.subr.bf16.mxu0 %v2223_v7  ;;  %808 = vmatprep.subr.bf16.mxu1 %v2226_v8  ;;  %v2304_v7 = vld [vmem:[#allocation2 + $0x2cc] ss:$48 sps:$4 sm:$0xff]   ;;  %v2302_v8 = vld [vmem:[#allocation2 + $0x2c8] ss:$48 sps:$4 sm:$0xff]  }
  0x63   :  { %768 = vmatpush1.bf16.msra.mxu0 %v2221_v9  ;;  %809 = vmatpush1.bf16.msra.mxu1 %v2224_v11  ;;  %v2305_v9 = vld [vmem:[#allocation5] ss:$16 sps:$4 sm:$0xff]   ;;  %v2307_v11 = vld [vmem:[#allocation5 + $0x4] ss:$16 sps:$4 sm:$0xff]  }
  0x64   :  { %769 = vmatprep.subr.bf16.mxu0 %v2229_v12  ;;  %810 = vmatprep.subr.bf16.mxu1 %v2232_v13  ;;  %v2310_v12 = vld [vmem:[#allocation5 + $0x24] ss:$16 sps:$4 sm:$0xff]   ;;  %v2308_v13 = vld [vmem:[#allocation5 + $0x20] ss:$16 sps:$4 sm:$0xff]  }
  0x67   :  { %770 = vmatpush1.bf16.msra.mxu0 %v2227_v14  ;;  %811 = vmatpush1.bf16.msra.mxu1 %v2230_v15  ;;  %v2313_v14 = vld [vmem:[#allocation5 + $0x44] ss:$16 sps:$4 sm:$0xff]   ;;  %v2311_v15 = vld [vmem:[#allocation5 + $0x40] ss:$16 sps:$4 sm:$0xff]  }
  0x68   :  { %837 = vmatprep.subr.bf16.mxu0 %v2235_v17  ;;  %878 = vmatprep.subr.bf16.mxu1 %v2238_v18  ;;  %v2316_v17 = vld [vmem:[#allocation5 + $0x64] ss:$16 sps:$4 sm:$0xff]   ;;  %v2314_v18 = vld [vmem:[#allocation5 + $0x60] ss:$16 sps:$4 sm:$0xff]  }
  0x6a   :  { %788 = vmatmul.mubr.bf16.vlgmr.msra.gmra.mrb[4].mxu0 %v2615_v47  ;;  %829 = vmatmul.mubr.bf16.vlgmr.msra.gmra.mrb[4].mxu1 %v2615_v47 }
  0x6b   :  { %838 = vmatpush1.bf16.msra.mxu0 %v2233_v19  ;;  %879 = vmatpush1.bf16.msra.mxu1 %v2236_v20  ;;  %v2317_v19 = vld [vmem:[#allocation5 + $0x80] ss:$16 sps:$4 sm:$0xff]   ;;  %v2322_v20 = vld [vmem:[#allocation5 + $0xa4] ss:$16 sps:$4 sm:$0xff]  }
  0x6c   :  { %839 = vmatprep.subr.bf16.mxu0 %v2241_v22  ;;  %880 = vmatprep.subr.bf16.mxu1 %v2244_v23  ;;  %v2320_v22 = vld [vmem:[#allocation5 + $0xa0] ss:$16 sps:$4 sm:$0xff]   ;;  %v2325_v23 = vld [vmem:[#allocation5 + $0xc4] ss:$16 sps:$4 sm:$0xff]  }
  0x6d   :  { %869 = vmatprep.mubr.bf16.mxu0 %v2470_v2  ;;  %910 = vmatprep.mubr.bf16.mxu1 %v2470_v2 }
  0x6f   :  { %840 = vmatpush1.bf16.msra.mxu0 %v2239_v24  ;;  %881 = vmatpush1.bf16.msra.mxu1 %v2242_v25  ;;  %v2323_v24 = vld [vmem:[#allocation5 + $0xc0] ss:$16 sps:$4 sm:$0xff]   ;;  %v2328_v25 = vld [vmem:[#allocation5 + $0xe4] ss:$16 sps:$4 sm:$0xff]  }
  0x70   :  { %841 = vmatprep.subr.bf16.mxu0 %v2247_v27  ;;  %882 = vmatprep.subr.bf16.mxu1 %v2250_v29  ;;  %v2326_v27 = vld [vmem:[#allocation5 + $0xe0] ss:$16 sps:$4 sm:$0xff]  }
  0x73   :  { %842 = vmatpush1.bf16.msra.mxu0 %v2245_v28  ;;  %883 = vmatpush1.bf16.msra.mxu1 %v2248_v30  ;;  %v2331_v28 = vld [vmem:[#allocation5 + $0xc] ss:$16 sps:$4 sm:$0xff]  }
  0x74   :  { %843 = vmatprep.subr.bf16.mxu0 %v2253_v31  ;;  %884 = vmatprep.subr.bf16.mxu1 %v2256_v33 }
  0x77   :  { %844 = vmatpush1.bf16.msra.mxu0 %v2251_v34  ;;  %885 = vmatpush1.bf16.msra.mxu1 %v2254_v35 }
  0x78   :  { %845 = vmatprep.subr.bf16.mxu0 %v2259_v36  ;;  %886 = vmatprep.subr.bf16.mxu1 %v2262_v38 }
  0x7b   :  { %846 = vmatpush1.bf16.msra.mxu0 %v2257_v39  ;;  %887 = vmatpush1.bf16.msra.mxu1 %v2260_v40 }
  0x7c   :  { %847 = vmatprep.subr.bf16.mxu0 %v2265_v41  ;;  %888 = vmatprep.subr.bf16.mxu1 %v2268_v43 }
  0x7f   :  { %848 = vmatpush1.bf16.msra.mxu0 %v2263_v44  ;;  %889 = vmatpush1.bf16.msra.mxu1 %v2266_v45 }
  0x80   :  { %849 = vmatprep.subr.bf16.mxu0 %v2271_v46  ;;  %890 = vmatprep.subr.bf16.mxu1 %v2274_v48 }
  0x83   :  { %850 = vmatpush1.bf16.msra.mxu0 %v2269_v49  ;;  %891 = vmatpush1.bf16.msra.mxu1 %v2272_v50 }
  0x84   :  { %851 = vmatprep.subr.bf16.mxu0 %v2277_v51  ;;  %892 = vmatprep.subr.bf16.mxu1 %v2280_v52 }
  0x87   :  { %852 = vmatpush1.bf16.msra.mxu0 %v2275_v53  ;;  %893 = vmatpush1.bf16.msra.mxu1 %v2278_v54 }
  0x88   :  { %919 = vmatprep.subr.bf16.mxu0 %v2283_v55  ;;  %2071 = vmatprep.subr.bf16.mxu1 %v2539_v5 }
  0x8a   :  { %870 = vmatmul.mubr.bf16.vlgmr.msra.gmra.mrb[8].mxu0 %v2615_v47  ;;  %911 = vmatmul.mubr.bf16.vlgmr.msra.gmra.mrb[8].mxu1 %v2615_v47 }
  0x8b   :  { %920 = vmatpush1.bf16.msra.mxu0 %v2281_v56  ;;  %951 = vmatprep.mubr.bf16.mxu0 %v2470_v2 }
  0x8c   :  { %921 = vmatprep.subr.bf16.mxu0 %v2286_v57  ;;  %2073 = vmatpush3.bf16.msra.mxu1 %v2539_v5 }
  0x8d   :  { %2075 = vmatprep.subr.bf16.mxu1 %v2548_v10 }
  0x8f   :  { %922 = vmatpush1.bf16.msra.mxu0 %v2284_v58 }
  0x90   :  { %923 = vmatprep.subr.bf16.mxu0 %v2289_v59  ;;  %2077 = vmatpush3.bf16.msra.mxu1 %v2548_v10 }
  0x91   :  { %2079 = vmatprep.subr.bf16.mxu1 %v2558_v16 }
  0x93   :  { %924 = vmatpush1.bf16.msra.mxu0 %v2287_v60 }
  0x94   :  { %925 = vmatprep.subr.bf16.mxu0 %v2292_v61  ;;  %2081 = vmatpush3.bf16.msra.mxu1 %v2558_v16 }
  0x95   :  { %2083 = vmatprep.subr.bf16.mxu1 %v2568_v21 }
  0x97   :  { %926 = vmatpush1.bf16.msra.mxu0 %v2290_v62 }
  0x98   :  { %927 = vmatprep.subr.bf16.mxu0 %v2295_v63  ;;  %2085 = vmatpush3.bf16.msra.mxu1 %v2568_v21 }
  0x99   :  { %2087 = vmatprep.subr.bf16.mxu1 %v2578_v26 }
  0x9b   :  { %928 = vmatpush1.bf16.msra.mxu0 %v2293_v0 }
  0x9c   :  { %929 = vmatprep.subr.bf16.mxu0 %v2298_v1  ;;  %2089 = vmatpush3.bf16.msra.mxu1 %v2578_v26 }
  0x9d   :  { %2091 = vmatprep.subr.bf16.mxu1 %v2588_v32 }
  0x9f   :  { %930 = vmatpush1.bf16.msra.mxu0 %v2296_v3 }
  0xa0   :  { %931 = vmatprep.subr.bf16.mxu0 %v2301_v4  ;;  %2093 = vmatpush3.bf16.msra.mxu1 %v2588_v32 }
  0xa1   :  { %2095 = vmatprep.subr.bf16.mxu1 %v2598_v37 }
  0xa3   :  { %932 = vmatpush1.bf16.msra.mxu0 %v2299_v6 }
  0xa4   :  { %933 = vmatprep.subr.bf16.mxu0 %v2304_v7  ;;  %2097 = vmatpush3.bf16.msra.mxu1 %v2598_v37 }
  0xa5   :  { %2099 = vmatprep.subr.bf16.mxu1 %v2608_v42 }
  0xa7   :  { %934 = vmatpush1.bf16.msra.mxu0 %v2302_v8 }
  0xa8   :  { %2101 = vmatpush3.bf16.msra.mxu1 %v2608_v42  ;;  %1318 = vmatprep.subr.bf16.mxu0 %v2307_v11 }
  0xa9   :  { %1381 = vmatprep.subr.bf16.mxu1 %v2331_v28 }
  0xaa   :  { %952 = vmatmul.mubr.bf16.vlgmr.msra.gmra.mrb[12].mxu0 %v2615_v47  ;;  %v2319_v47 = vld [vmem:[#allocation5 + $0x84] ss:$16 sps:$4 sm:$0xff]  }
  0xab   :  { %1350 = vmatprep.mubr.bf16.mxu0 %v2470_v2  ;;  %1319 = vmatpush1.bf16.msra.mxu0 %v2305_v9 }
  0xac   :  { %1320 = vmatprep.subr.bf16.mxu0 %v2310_v12 }
  0xaf   :  { %1321 = vmatpush1.bf16.msra.mxu0 %v2308_v13 }
  0xb0   :  { %1322 = vmatprep.subr.bf16.mxu0 %v2313_v14 }
  0xb3   :  { %1323 = vmatpush1.bf16.msra.mxu0 %v2311_v15 }
  0xb4   :  { %1324 = vmatprep.subr.bf16.mxu0 %v2316_v17  ;;  %v2329_v17 = vld [vmem:[#allocation5 + $0x8] ss:$16 sps:$4 sm:$0xff]  }
  0xb7   :  { %1325 = vmatpush1.bf16.msra.mxu0 %v2314_v18 }
  0xb8   :  { %1326 = vmatprep.subr.bf16.mxu0 %v2319_v47 }
  0xbb   :  { %1327 = vmatpush1.bf16.msra.mxu0 %v2317_v19 }
  0xbc   :  { %1328 = vmatprep.subr.bf16.mxu0 %v2322_v20 }
  0xbf   :  { %1329 = vmatpush1.bf16.msra.mxu0 %v2320_v22  ;;  %v2334_v22 = vld [vmem:[#allocation5 + $0x2c] ss:$16 sps:$4 sm:$0xff]  }
  0xc0   :  { %1330 = vmatprep.subr.bf16.mxu0 %v2325_v23 }
  0xc3   :  { %1331 = vmatpush1.bf16.msra.mxu0 %v2323_v24 }
  0xc4   :  { %1332 = vmatprep.subr.bf16.mxu0 %v2328_v25 }
  0xc7   :  { %1333 = vmatpush1.bf16.msra.mxu0 %v2326_v27 }
  0xc8   :  { %2103 = vmatprep.subr.bf16.mxu0 %v2539_v5 }
 0x11d   :  { %v229_v29 = vpop.f32.mrb[0].mxu0  ;;  %v748_v31 = vpop.f32.mrb[0].mxu1 }
 0x11e   :  { %v1954_v30 = vpop.f32.mrb[1].mxu0  ;;  %1116 = vst.msk [vmem:[#allocation7] sm:$0xff] %vm1115_vm1, %v229_v29  ;;  %v750_v33 = vpop.f32.mrb[1].mxu1  ;;  %v960_v48 = vmul.f32 %v748_v31, %v748_v31  ;;  %v2332_v31 = vld [vmem:[#allocation5 + $0x28] ss:$16 sps:$4 sm:$0xff]  }
 0x11f   :  { %v752_v34 = vpop.f32.mrb[2].mxu1  ;;  %v961_v52 = vmul.f32 %v750_v33, %v750_v33 }
 0x120   :  { %v753_v35 = vpop.f32.mrb[3].mxu1  ;;  %v2337_v34 = vld [vmem:[#allocation5 + $0x4c] ss:$16 sps:$4 sm:$0xff]  }
 0x121   :  { %v2335_v35 = vld [vmem:[#allocation5 + $0x48] ss:$16 sps:$4 sm:$0xff]  }
 0x13d   :  { %v789_v36 = vpop.f32.mrb[4].mxu0  ;;  %v2647_v39 = vpop.f32.mrb[4].mxu1 }
 0x13e   :  { %v791_v38 = vpop.f32.mrb[5].mxu0  ;;  %v2649_v41 = vpop.f32.mrb[5].mxu1  ;;  %v962_v53 = vmul.f32 %v789_v36, %v789_v36  ;;  %v2340_v36 = vld [vmem:[#allocation5 + $0x6c] ss:$16 sps:$4 sm:$0xff]  }
 0x13f   :  { %v793_v40 = vpop.f32.mrb[6].mxu0  ;;  %v834_v44 = vpop.f32.mrb[6].mxu1  ;;  %v963_v58 = vmul.f32 %v791_v38, %v791_v38  ;;  %v2338_v38 = vld [vmem:[#allocation5 + $0x68] ss:$16 sps:$4 sm:$0xff]  }
 0x140   :  { %v794_v43 = vpop.f32.mrb[7].mxu0  ;;  %v835_v45 = vpop.f32.mrb[7].mxu1  ;;  %v2343_v40 = vld [vmem:[#allocation5 + $0x8c] ss:$16 sps:$4 sm:$0xff]   ;;  %v964_v44 = vmul.f32 %v2647_v39, %v2647_v39  ;;  %v2344_v39 = vld [vmem:[#allocation5 + $0xa8] ss:$16 sps:$4 sm:$0xff]  }
 0x15d   :  { %v871_v46 = vpop.f32.mrb[8].mxu0  ;;  %v912_v51 = vpop.f32.mrb[8].mxu1 }
 0x15e   :  { %v966_v49 = vmul.f32 %v871_v46, %v871_v46  ;;  %v873_v50 = vpop.f32.mrb[9].mxu0  ;;  %v968_v55 = vmul.f32 %v912_v51, %v912_v51  ;;  %v914_v57 = vpop.f32.mrb[9].mxu1  ;;  %v2341_v51 = vld [vmem:[#allocation5 + $0x88] ss:$16 sps:$4 sm:$0xff]  }
 0x15f   :  { %v967_v54 = vmul.f32 %v873_v50, %v873_v50  ;;  %v875_v56 = vpop.f32.mrb[10].mxu0  ;;  %v969_v60 = vmul.f32 %v914_v57, %v914_v57  ;;  %v916_v62 = vpop.f32.mrb[10].mxu1  ;;  %v2352_v57 = vld [vmem:[#allocation5 + $0xec] ss:$16 sps:$4 sm:$0xff]  }
 0x160   :  { %v972_v59 = vadd.f32 %v966_v49, %v960_v48  ;;  %v876_v61 = vpop.f32.mrb[11].mxu0  ;;  %v974_v0 = vadd.f32 %v968_v55, %v962_v53  ;;  %v917_v1 = vpop.f32.mrb[11].mxu1  ;;  %v965_v48 = vmul.f32 %v2649_v41, %v2649_v41  ;;  %v2349_v56 = vld [vmem:[#allocation5 + $0xcc] ss:$16 sps:$4 sm:$0xff]   ;;  %v2347_v41 = vld [vmem:[#allocation5 + $0xc8] ss:$16 sps:$4 sm:$0xff]  }
 0x161   :  { %v973_v63 = vadd.f32 %v967_v54, %v961_v52  ;;  %v975_v3 = vadd.f32 %v969_v60, %v963_v58  ;;  %v2346_v54 = vld [vmem:[#allocation5 + $0xac] ss:$16 sps:$4 sm:$0xff]   ;;  %v2350_v58 = vld [vmem:[#allocation5 + $0xe8] ss:$16 sps:$4 sm:$0xff]  }
 0x162   :  { %2353 = vrsqrt.f32 %v972_v59  ;;  %vm980_vm2 = vcmp.eq.f32.partialorder %v972_v59, inf  ;;  %vm982_vm3 = vcmp.eq.f32.partialorder %v972_v59, 0.0  ;;  %v983_v8 = vand.u32 2147483648, %v972_v59 }
 0x163   :  { %2355 = vrsqrt.f32 %v973_v63  ;;  %vm987_vm4 = vcmp.eq.f32.partialorder %v973_v63, inf  ;;  %vm989_vm5 = vcmp.eq.f32.partialorder %v973_v63, 0.0  ;;  %v990_v12 = vand.u32 2147483648, %v973_v63 }
 0x164   :  { %2357 = vrsqrt.f32 %v974_v0  ;;  %vm994_vm6 = vcmp.eq.f32.partialorder %v974_v0, inf  ;;  %vm996_vm7 = vcmp.eq.f32.partialorder %v974_v0, 0.0  ;;  %v997_v47 = vand.u32 2147483648, %v974_v0 }
 0x165   :  { %2359 = vrsqrt.f32 %v975_v3  ;;  %vm1001_vm8 = vcmp.eq.f32.partialorder %v975_v3, inf  ;;  %v1004_v25 = vand.u32 2147483648, %v975_v3  ;;  %vm1003_vm9 = vcmp.eq.f32.partialorder %v975_v3, 0.0 }
 0x16c   :  { %v2354_v4 = vpop.eup %2353 }
 0x16d   :  { %v2356_v6 = vpop.eup %2355  ;;  %v979_v7 = vmul.f32 %v2354_v4, %v972_v59 }
 0x16e   :  { %v2358_v9 = vpop.eup %2357  ;;  %v986_v11 = vmul.f32 %v2356_v6, %v973_v63 }
 0x16f   :  { %v2360_v13 = vpop.eup %2359  ;;  %v981_v14 = vsel %vm980_vm2, %v972_v59, %v979_v7  ;;  %v993_v15 = vmul.f32 %v2358_v9, %v974_v0 }
 0x170   :  { %v984_v18 = vsel %vm982_vm3, %v983_v8, %v981_v14  ;;  %v988_v19 = vsel %vm987_vm4, %v973_v63, %v986_v11  ;;  %v1000_v20 = vmul.f32 %v2360_v13, %v975_v3 }
 0x171   :  { %v991_v23 = vsel %vm989_vm5, %v990_v12, %v988_v19  ;;  %1987 = vmatprep.mubr.f32.mxu1 %v984_v18  ;;  %v995_v24 = vsel %vm994_vm6, %v974_v0, %v993_v15 }
 0x172   :  { %v2651_v27 = vpack.c.bf16 %v991_v23, %v984_v18  ;;  %1988 = vmatmul.mubr.f32.vlgmr.msra.gmra.mrb[12].mxu1 %v991_v23  ;;  %v998_v28 = vsel %vm996_vm7, %v997_v47, %v995_v24  ;;  %v1002_v29 = vsel %vm1001_vm8, %v975_v3, %v1000_v20 }
 0x173   :  { %1990 = vmatprep.mubr.f32.mxu1 %v998_v28  ;;  %v1005_v30 = vsel %vm1003_vm9, %v1004_v25, %v1002_v29  ;;  %1382 = vmatpush1.bf16.msra.mxu1 %v2329_v17 }
 0x174   :  { %1351 = vmatmul.mubr.bf16.vlgmr.msra.gmra.mrb[16].mxu0 %v2651_v27  ;;  %v2654_v33 = vpack.c.bf16 %v1005_v30, %v998_v28  ;;  %1383 = vmatprep.subr.bf16.mxu1 %v2334_v22 }
 0x175   :  { %1360 = vmatprep.mubr.bf16.mxu0 %v2470_v2  ;;  %2105 = vmatpush3.bf16.msra.mxu0 %v2539_v5 }
 0x176   :  { %1991 = vmatmul.mubr.f32.gmra.mrb[14].mxu1 %v1005_v30  ;;  %2107 = vmatprep.subr.bf16.mxu0 %v2548_v10 }
 0x177   :  { %1384 = vmatpush1.bf16.msra.mxu1 %v2332_v31 }
 0x178   :  { %1385 = vmatprep.subr.bf16.mxu1 %v2337_v34 }
 0x179   :  { %2109 = vmatpush3.bf16.msra.mxu0 %v2548_v10 }
 0x17a   :  { %2111 = vmatprep.subr.bf16.mxu0 %v2558_v16 }
 0x17b   :  { %1386 = vmatpush1.bf16.msra.mxu1 %v2335_v35 }
 0x17c   :  { %1361 = vmatmul.mubr.bf16.gmra.mrb[20].mxu0 %v2654_v33  ;;  %1387 = vmatprep.subr.bf16.mxu1 %v2340_v36 }
 0x17d   :  { %v953_v43 = vpop.f32.mrb[12].mxu0  ;;  %1370 = vmatprep.mubr.bf16.mxu0 %v2470_v2  ;;  %2113 = vmatpush3.bf16.msra.mxu0 %v2558_v16 }
 0x17e   :  { %v970_v45 = vmul.f32 %v953_v43, %v953_v43  ;;  %v955_v46 = vpop.f32.mrb[13].mxu0  ;;  %2115 = vmatprep.subr.bf16.mxu0 %v2568_v21 }
 0x17f   :  { %v971_v49 = vmul.f32 %v955_v46, %v955_v46  ;;  %v957_v50 = vpop.f32.mrb[14].mxu0  ;;  %1388 = vmatpush1.bf16.msra.mxu1 %v2338_v38 }
 0x180   :  { %v976_v52 = vadd.f32 %v970_v45, %v964_v44  ;;  %v958_v53 = vpop.f32.mrb[15].mxu0  ;;  %1389 = vmatprep.subr.bf16.mxu1 %v2343_v40 }
 0x181   :  { %v977_v55 = vadd.f32 %v971_v49, %v965_v48  ;;  %2117 = vmatpush3.bf16.msra.mxu0 %v2568_v21 }
 0x182   :  { %2361 = vrsqrt.f32 %v976_v52  ;;  %2119 = vmatprep.subr.bf16.mxu0 %v2578_v26  ;;  %vm1008_vm10 = vcmp.eq.f32.partialorder %v976_v52, inf  ;;  %v1011_v62 = vand.u32 2147483648, %v976_v52  ;;  %vm1010_vm11 = vcmp.eq.f32.partialorder %v976_v52, 0.0 }
 0x183   :  { %1390 = vmatpush1.bf16.msra.mxu1 %v2341_v51  ;;  %2363 = vrsqrt.f32 %v977_v55  ;;  %vm1015_vm12 = vcmp.eq.f32.partialorder %v977_v55, inf  ;;  %v1018_v1 = vand.u32 2147483648, %v977_v55  ;;  %vm1017_vm13 = vcmp.eq.f32.partialorder %v977_v55, 0.0 }
 0x184   :  { %1391 = vmatprep.subr.bf16.mxu1 %v2346_v54 }
 0x185   :  { %2121 = vmatpush3.bf16.msra.mxu0 %v2578_v26 }
 0x186   :  { %2123 = vmatprep.subr.bf16.mxu0 %v2588_v32 }
 0x187   :  { %1392 = vmatpush1.bf16.msra.mxu1 %v2344_v39 }
 0x188   :  { %1393 = vmatprep.subr.bf16.mxu1 %v2349_v56 }
 0x189   :  { %2125 = vmatpush3.bf16.msra.mxu0 %v2588_v32 }
 0x18a   :  { %2127 = vmatprep.subr.bf16.mxu0 %v2598_v37 }
 0x18b   :  { %1394 = vmatpush1.bf16.msra.mxu1 %v2347_v41 }
 0x18c   :  { %v2362_v59 = vpop.eup %2361  ;;  %1395 = vmatprep.subr.bf16.mxu1 %v2352_v57 }
 0x18d   :  { %v2364_v60 = vpop.eup %2363  ;;  %v1007_v61 = vmul.f32 %v2362_v59, %v976_v52  ;;  %2129 = vmatpush3.bf16.msra.mxu0 %v2598_v37 }
 0x18e   :  { %v1014_v63 = vmul.f32 %v2364_v60, %v977_v55  ;;  %2131 = vmatprep.subr.bf16.mxu0 %v2608_v42 }
 0x18f   :  { %v1009_v0 = vsel %vm1008_vm10, %v976_v52, %v1007_v61  ;;  %1396 = vmatpush1.bf16.msra.mxu1 %v2350_v58 }
 0x190   :  { %v1012_v3 = vsel %vm1010_vm11, %v1011_v62, %v1009_v0  ;;  %v1016_v4 = vsel %vm1015_vm12, %v977_v55, %v1014_v63  ;;  %2134 = vmatprep.subr.bf16.mxu1 %v2539_v5 }
 0x191   :  { %1993 = vmatprep.mubr.f32.mxu1 %v1012_v3  ;;  %v1019_v6 = vsel %vm1017_vm13, %v1018_v1, %v1016_v4  ;;  %2133 = vmatpush3.bf16.msra.mxu0 %v2608_v42 }
 0x192   :  { %1994 = vmatmul.mubr.f32.gmra.mrb[16].mxu1 %v1019_v6  ;;  %v1125_v7 = vpack.c.bf16 %v1019_v6, %v1012_v3 }
 0x193   :  { %1413 = vmatprep.mubr.bf16.mxu1 %v2470_v2 }
 0x194   :  { %1371 = vmatmul.mubr.bf16.gmra.mrb[24].mxu0 %v1125_v7 }
 0x196   :  { %1414 = vmatmul.mubr.bf16.vlgmr.msra.gmra.mrb[20].mxu1 %v2651_v27 }
 0x197   :  { %1423 = vmatprep.mubr.bf16.mxu1 %v2470_v2  ;;  %2142 = vmatpush3.bf16.msra.mxu1 %v2539_v5 }
 0x198   :  { %2135 = vmatprep.subr.bf16.mxu1 %v2548_v10 }
 0x19b   :  { %2143 = vmatpush3.bf16.msra.mxu1 %v2548_v10 }
 0x19c   :  { %2136 = vmatprep.subr.bf16.mxu1 %v2558_v16 }
 0x19e   :  { %1424 = vmatmul.mubr.bf16.gmra.mrb[24].mxu1 %v2654_v33 }
 0x19f   :  { %1433 = vmatprep.mubr.bf16.mxu1 %v2470_v2  ;;  %2144 = vmatpush3.bf16.msra.mxu1 %v2558_v16 }
 0x1a0   :  { %2137 = vmatprep.subr.bf16.mxu1 %v2568_v21 }
 0x1a3   :  { %2145 = vmatpush3.bf16.msra.mxu1 %v2568_v21 }
 0x1a4   :  { %2138 = vmatprep.subr.bf16.mxu1 %v2578_v26 }
 0x1a6   :  { %1434 = vmatmul.mubr.bf16.gmra.mrb[28].mxu1 %v1125_v7 }
 0x1a7   :  { %2146 = vmatpush3.bf16.msra.mxu1 %v2578_v26 }
 0x1a8   :  { %2139 = vmatprep.subr.bf16.mxu1 %v2588_v32 }
 0x1ab   :  { %2147 = vmatpush3.bf16.msra.mxu1 %v2588_v32 }
 0x1ac   :  { %2140 = vmatprep.subr.bf16.mxu1 %v2598_v37 }
 0x1af   :  { %2148 = vmatpush3.bf16.msra.mxu1 %v2598_v37 }
 0x1b0   :  { %2141 = vmatprep.subr.bf16.mxu1 %v2608_v42 }
 0x1b3   :  { %2149 = vmatpush3.bf16.msra.mxu1 %v2608_v42 }
 0x245   :  { %v1989_v2 = vpop.f32.mrb[12].mxu1 }
 0x246   :  { %1118 = vst.msk [vmem:[%s2902_s5 + $0x8] sm:$0xff] %vm1115_vm1, %v1989_v2  ;;  %v1086_v5 = vpop.f32.mrb[13].mxu1 }
 0x247   :  { %1117 = vst.msk [vmem:[%s2902_s5] sm:$0xff] %vm1115_vm1, %v1086_v5  ;;  %v1352_v10 = vpop.f32.mrb[16].mxu0 }
 0x248   :  { %v1354_v16 = vpop.f32.mrb[17].mxu0  ;;  %v1444_v19 = vmul.f32 %v1352_v10, %v1352_v10 }
 0x249   :  { %v1992_v21 = vpop.f32.mrb[14].mxu1  ;;  %v1356_v26 = vpop.f32.mrb[18].mxu0  ;;  %v1445_v23 = vmul.f32 %v1354_v16, %v1354_v16 }
 0x24a   :  { %1120 = vst.msk [vmem:[%s2902_s5 + $0x18] sm:$0xff] %vm1115_vm1, %v1992_v21  ;;  %v1096_v32 = vpop.f32.mrb[15].mxu1  ;;  %v1358_v37 = vpop.f32.mrb[19].mxu0  ;;  %v1446_v27 = vmul.f32 %v1356_v26, %v1356_v26 }
 0x24b   :  { %1119 = vst.msk [vmem:[%s2902_s5 + $0x10] sm:$0xff] %vm1115_vm1, %v1096_v32  ;;  %v1447_v31 = vmul.f32 %v1358_v37, %v1358_v37 }
 0x24f   :  { %v1362_v42 = vpop.f32.mrb[20].mxu0 }
 0x250   :  { %v1364_v8 = vpop.f32.mrb[21].mxu0  ;;  %v1448_v40 = vmul.f32 %v1362_v42, %v1362_v42 }
 0x251   :  { %v1366_v9 = vpop.f32.mrb[22].mxu0  ;;  %v1449_v45 = vmul.f32 %v1364_v8, %v1364_v8 }
 0x252   :  { %v1368_v11 = vpop.f32.mrb[23].mxu0  ;;  %v1450_v49 = vmul.f32 %v1366_v9, %v1366_v9 }
 0x253   :  { %v1451_v50 = vmul.f32 %v1368_v11, %v1368_v11 }
 0x265   :  { %v1995_v12 = vpop.f32.mrb[16].mxu1 }
 0x266   :  { %1122 = vst.msk [vmem:[%s2902_s5 + $0x28] sm:$0xff] %vm1115_vm1, %v1995_v12  ;;  %v1106_v13 = vpop.f32.mrb[17].mxu1 }
 0x267   :  { %1121 = vst.msk [vmem:[%s2902_s5 + $0x20] sm:$0xff] %vm1115_vm1, %v1106_v13  ;;  %v1372_v14 = vpop.f32.mrb[24].mxu0  ;;  %s2471_s5 = smov [#allocation7]  }
 0x268   :  { %v1374_v15 = vpop.f32.mrb[25].mxu0  ;;  %v1452_v54 = vmul.f32 %v1372_v14, %v1372_v14  ;;  %s1707_s17 = sshll.u32 %s2471_s5, 4  ;;  %s1708_s17 = int_to_ptr.vmem [resolvable:$true] %s1707_s17 }
 0x269   :  { %v1376_v17 = vpop.f32.mrb[26].mxu0  ;;  %v1415_v18 = vpop.f32.mrb[20].mxu1  ;;  %v1453_v55 = vmul.f32 %v1374_v15, %v1374_v15  ;;  %s2433_s18 = scalar_lea.vmem %s1708_s17, 128  ;;  %p2438_p3 = scmp.lt.s32.totalorder %s1708_s17, %s1708_s17 }
 0x26a   :  { %v1456_v47 = vmul.f32 %v1415_v18, %v1415_v18  ;;  %v1378_v20 = vpop.f32.mrb[27].mxu0  ;;  %v1417_v22 = vpop.f32.mrb[21].mxu1  ;;  %v1454_v41 = vmul.f32 %v1376_v17, %v1376_v17  ;;  %p2434_p2 = scmp.ne.s32.totalorder %s1708_s17, %s2433_s18  ;;  %p2439_p4 = scmp.lt.s32.totalorder %s2433_s18, %s2433_s18 }
 0x26b   :  { %v1457_v24 = vmul.f32 %v1417_v22, %v1417_v22  ;;  %v1419_v25 = vpop.f32.mrb[22].mxu1  ;;  %v1455_v57 = vmul.f32 %v1378_v20, %v1378_v20 }
 0x26c   :  { %v2723_v28 = vadd.f32 %v1456_v47, %v1444_v19  ;;  %v1458_v29 = vmul.f32 %v1419_v25, %v1419_v25  ;;  %v1421_v30 = vpop.f32.mrb[23].mxu1  ;;  %p2440_p5 = por %p2439_p4, %p2438_p3 }
 0x26d   :  { %v2725_v33 = vadd.f32 %v1457_v24, %v1445_v23  ;;  %v1459_v34 = vmul.f32 %v1421_v30, %v1421_v30 }
 0x26e   :  { %v2727_v35 = vadd.f32 %v1458_v29, %v1446_v27  ;;  %2365 = vrsqrt.f32 %v2723_v28  ;;  %vm1482_vm14 = vcmp.eq.f32.partialorder %v2723_v28, inf  ;;  %vm1484_vm15 = vcmp.eq.f32.partialorder %v2723_v28, 0.0  ;;  %p2441_p6 = pnand %p2440_p5, %p2434_p2 }
 0x26f   :  { %v2730_v36 = vadd.f32 %v1459_v34, %v1447_v31  ;;  %2367 = vrsqrt.f32 %v2725_v33  ;;  %v1485_v61 = vand.u32 2147483648, %v2723_v28  ;;  %vm1489_vm0 = vcmp.eq.f32.partialorder %v2725_v33, inf }
 0x270   :  { %2369 = vrsqrt.f32 %v2727_v35  ;;  %vm1491_vm2 = vcmp.eq.f32.partialorder %v2725_v33, 0.0  ;;  %v1492_v1 = vand.u32 2147483648, %v2725_v33  ;;  %vm1496_vm3 = vcmp.eq.f32.partialorder %v2727_v35, inf }
 0x271   :  { %2371 = vrsqrt.f32 %v2730_v36  ;;  %v1425_v38 = vpop.f32.mrb[24].mxu1  ;;  %vm1498_vm4 = vcmp.eq.f32.partialorder %v2727_v35, 0.0  ;;  %v1499_v2 = vand.u32 2147483648, %v2727_v35  ;;  %vm1503_vm5 = vcmp.eq.f32.partialorder %v2730_v36, inf }
 0x272   :  { %v1460_v43 = vmul.f32 %v1425_v38, %v1425_v38  ;;  %v1427_v44 = vpop.f32.mrb[25].mxu1  ;;  %vm1505_vm6 = vcmp.eq.f32.partialorder %v2730_v36, 0.0  ;;  %v1506_v47 = vand.u32 2147483648, %v2730_v36 }
 0x273   :  { %v1461_v46 = vmul.f32 %v1427_v44, %v1427_v44  ;;  %v1429_v48 = vpop.f32.mrb[26].mxu1 }
 0x274   :  { %v2735_v51 = vadd.f32 %v1460_v43, %v1448_v40  ;;  %v1462_v52 = vmul.f32 %v1429_v48, %v1429_v48  ;;  %v1431_v53 = vpop.f32.mrb[27].mxu1 }
 0x275   :  { %v2737_v39 = vadd.f32 %v1461_v46, %v1449_v45  ;;  %v1463_v56 = vmul.f32 %v1431_v53, %v1431_v53 }
 0x276   :  { %v2739_v58 = vadd.f32 %v1462_v52, %v1450_v49  ;;  %2373 = vrsqrt.f32 %v2735_v51  ;;  %vm1510_vm7 = vcmp.eq.f32.partialorder %v2735_v51, inf  ;;  %vm1512_vm8 = vcmp.eq.f32.partialorder %v2735_v51, 0.0 }
 0x277   :  { %v2742_v59 = vadd.f32 %v1463_v56, %v1451_v50  ;;  %2375 = vrsqrt.f32 %v2737_v39  ;;  %v1513_v23 = vand.u32 2147483648, %v2735_v51  ;;  %vm1517_vm9 = vcmp.eq.f32.partialorder %v2737_v39, inf }
 0x278   :  { %v2366_v60 = vpop.eup %2365  ;;  %2377 = vrsqrt.f32 %v2739_v58  ;;  %vm1519_vm10 = vcmp.eq.f32.partialorder %v2737_v39, 0.0  ;;  %v1520_v30 = vand.u32 2147483648, %v2737_v39  ;;  %vm1524_vm11 = vcmp.eq.f32.partialorder %v2739_v58, inf }
 0x279   :  { %v2368_v62 = vpop.eup %2367  ;;  %v1435_v63 = vpop.f32.mrb[28].mxu1  ;;  %v1481_v0 = vmul.f32 %v2366_v60, %v2723_v28  ;;  %2379 = vrsqrt.f32 %v2742_v59  ;;  %vm1526_vm12 = vcmp.eq.f32.partialorder %v2739_v58, 0.0  ;;  %v1527_v38 = vand.u32 2147483648, %v2739_v58 }
 0x27a   :  { %v2370_v3 = vpop.eup %2369  ;;  %v1464_v4 = vmul.f32 %v1435_v63, %v1435_v63  ;;  %v1437_v6 = vpop.f32.mrb[29].mxu1  ;;  %v1488_v7 = vmul.f32 %v2368_v62, %v2725_v33  ;;  %vm1531_vm13 = vcmp.eq.f32.partialorder %v2742_v59, inf  ;;  %v1534_v45 = vand.u32 2147483648, %v2742_v59 }
 0x27b   :  { %v2372_v5 = vpop.eup %2371  ;;  %v1465_v10 = vmul.f32 %v1437_v6, %v1437_v6  ;;  %v1439_v16 = vpop.f32.mrb[30].mxu1  ;;  %v1483_v21 = vsel %vm1482_vm14, %v2723_v28, %v1481_v0  ;;  %v1495_v26 = vmul.f32 %v2370_v3, %v2727_v35  ;;  %vm1533_vm14 = vcmp.eq.f32.partialorder %v2742_v59, 0.0 }
 0x27c   :  { %v2763_v32 = vadd.f32 %v1464_v4, %v1452_v54  ;;  %v1466_v37 = vmul.f32 %v1439_v16, %v1439_v16  ;;  %v1441_v42 = vpop.f32.mrb[31].mxu1  ;;  %v1486_v8 = vsel %vm1484_vm15, %v1485_v61, %v1483_v21  ;;  %v1490_v9 = vsel %vm1489_vm0, %v2725_v33, %v1488_v7 }
 0x27d   :  { %v2770_v11 = vadd.f32 %v1465_v10, %v1453_v55  ;;  %v1467_v12 = vmul.f32 %v1441_v42, %v1441_v42  ;;  %2028 = vmatprep.mubr.f32.mxu0 %v1486_v8  ;;  %v1493_v13 = vsel %vm1491_vm2, %v1492_v1, %v1490_v9  ;;  %v1497_v14 = vsel %vm1496_vm3, %v2727_v35, %v1495_v26 }
 0x27e   :  { %v2777_v15 = vadd.f32 %v1466_v37, %v1454_v41  ;;  %2037 = vmatprep.mubr.f32.mxu1 %v1493_v13  ;;  %v1500_v17 = vsel %vm1498_vm4, %v1499_v2, %v1497_v14  ;;  %v1502_v18 = vmul.f32 %v2372_v5, %v2730_v36  ;;  %2381 = vrsqrt.f32 %v2763_v32 }
 0x27f   :  { %v2783_v19 = vadd.f32 %v1467_v12, %v1455_v57  ;;  %2029 = vmatmul.mubr.f32.vlgmr.msra.gmra.mrb[2].mxu0 %v1500_v17  ;;  %2383 = vrsqrt.f32 %v2770_v11  ;;  %vm1538_vm15 = vcmp.eq.f32.partialorder %v2763_v32, inf  ;;  %v1541_v53 = vand.u32 2147483648, %v2763_v32 }
 0x280   :  { %v2374_v20 = vpop.eup %2373  ;;  %v1504_v22 = vsel %vm1503_vm5, %v2730_v36, %v1502_v18  ;;  %2385 = vrsqrt.f32 %v2777_v15  ;;  %vm1540_vm0 = vcmp.eq.f32.partialorder %v2763_v32, 0.0  ;;  %vm1545_vm2 = vcmp.eq.f32.partialorder %v2770_v11, inf }
 0x281   :  { %v2376_v24 = vpop.eup %2375  ;;  %v1507_v25 = vsel %vm1505_vm6, %v1506_v47, %v1504_v22  ;;  %v1509_v27 = vmul.f32 %v2374_v20, %v2735_v51  ;;  %2387 = vrsqrt.f32 %v2783_v19  ;;  %v1548_v41 = vand.u32 2147483648, %v2770_v11 }
 0x282   :  { %v2378_v28 = vpop.eup %2377  ;;  %2038 = vmatmul.mubr.f32.vlgmr.msra.gmra.mrb[18].mxu1 %v1507_v25  ;;  %v1516_v29 = vmul.f32 %v2376_v24, %v2737_v39  ;;  %vm1547_vm3 = vcmp.eq.f32.partialorder %v2770_v11, 0.0  ;;  %vm1552_vm4 = vcmp.eq.f32.partialorder %v2777_v15, inf  ;;  %v1555_v60 = vand.u32 2147483648, %v2777_v15 }
 0x283   :  { %v2380_v31 = vpop.eup %2379  ;;  %v1511_v33 = vsel %vm1510_vm7, %v2735_v51, %v1509_v27  ;;  %v1523_v34 = vmul.f32 %v2378_v28, %v2739_v58  ;;  %vm1554_vm5 = vcmp.eq.f32.partialorder %v2777_v15, 0.0  ;;  %vm1559_vm6 = vcmp.eq.f32.partialorder %v2783_v19, inf }
 0x284   :  { %v1514_v35 = vsel %vm1512_vm8, %v1513_v23, %v1511_v33  ;;  %v1518_v36 = vsel %vm1517_vm9, %v2737_v39, %v1516_v29  ;;  %v1530_v40 = vmul.f32 %v2380_v31, %v2742_v59  ;;  %v1562_v1 = vand.u32 2147483648, %v2783_v19 }
 0x285   :  { %2031 = vmatprep.mubr.f32.mxu0 %v1514_v35  ;;  %v1521_v43 = vsel %vm1519_vm10, %v1520_v30, %v1518_v36  ;;  %v1525_v44 = vsel %vm1524_vm11, %v2739_v58, %v1523_v34  ;;  %vm1561_vm7 = vcmp.eq.f32.partialorder %v2783_v19, 0.0 }
 0x286   :  { %2040 = vmatprep.mubr.f32.mxu1 %v1521_v43  ;;  %v1528_v46 = vsel %vm1526_vm12, %v1527_v38, %v1525_v44  ;;  %v1532_v48 = vsel %vm1531_vm13, %v2742_v59, %v1530_v40 }
 0x287   :  { %2032 = vmatmul.mubr.f32.gmra.mrb[28].mxu0 %v1528_v46  ;;  %v1535_v49 = vsel %vm1533_vm14, %v1534_v45, %v1532_v48 }
 0x288   :  { %v2382_v50 = vpop.eup %2381  ;;  %2041 = vmatmul.mubr.f32.gmra.mrb[32].mxu1 %v1535_v49 }
 0x289   :  { %v1537_v51 = vmul.f32 %v2382_v50, %v2763_v32  ;;  %v2384_v52 = vpop.eup %2383 }
 0x28a   :  { %v2386_v54 = vpop.eup %2385  ;;  %v1544_v39 = vmul.f32 %v2384_v52, %v2770_v11 }
 0x28b   :  { %v1539_v55 = vsel %vm1538_vm15, %v2763_v32, %v1537_v51  ;;  %v1551_v57 = vmul.f32 %v2386_v54, %v2777_v15  ;;  %v2388_v58 = vpop.eup %2387 }
 0x28c   :  { %v1542_v56 = vsel %vm1540_vm0, %v1541_v53, %v1539_v55  ;;  %v1546_v59 = vsel %vm1545_vm2, %v2770_v11, %v1544_v39  ;;  %v1558_v63 = vmul.f32 %v2388_v58, %v2783_v19 }
 0x28d   :  { %2034 = vmatprep.mubr.f32.mxu0 %v1542_v56  ;;  %v1549_v61 = vsel %vm1547_vm3, %v1548_v41, %v1546_v59  ;;  %v1553_v62 = vsel %vm1552_vm4, %v2777_v15, %v1551_v57 }
 0x28e   :  { %2043 = vmatprep.mubr.f32.mxu1 %v1549_v61  ;;  %v1556_v0 = vsel %vm1554_vm5, %v1555_v60, %v1553_v62  ;;  %v1560_v3 = vsel %vm1559_vm6, %v2783_v19, %v1558_v63 }
 0x28f   :  { %2035 = vmatmul.mubr.f32.gmra.mrb[30].mxu0 %v1556_v0  ;;  %v1563_v4 = vsel %vm1561_vm7, %v1562_v1, %v1560_v3 }
 0x290   :  { %2044 = vmatmul.mubr.f32.gmra.mrb[34].mxu1 %v1563_v4 }
 0x291   :  { %2444 = shalt.err (!%p2441_p6)
}
 0x292   :  { %s2445_s1 = scalar_lea.hbm %s2901_s4, 128 }
 0x293   :  { %p2446_p7 = scmp.ne.s32.totalorder %s2901_s4, %s2445_s1  ;;  %p2449_p8 = scmp.lt.u32.totalorder %s2445_s1, %s2901_s4 }
 0x295   :  { %p2451_p9 = pnand %p2449_p8, %p2446_p7 }
 0x297   :  { %2454 = shalt.err (!%p2451_p9)
}
 0x298   :  { %1710 = dma.vmem_to_hbm [thread:$0]  %s1708_s17, 128, %s2901_s4, [#allocation4]  }
 0x352   :  { %v2030_v6 = vpop.f32.mrb[2].mxu0 }
 0x353   :  { %1690 = vst.msk [vmem:[%s2903_s6 + $0x8] sm:$0xff] %vm1115_vm1, %v2030_v6  ;;  %v1630_v7 = vpop.f32.mrb[3].mxu0 }
 0x354   :  { %1689 = vst.msk [vmem:[%s2903_s6] sm:$0xff] %vm1115_vm1, %v1630_v7 }
 0x355   :  { %v2039_v2 = vpop.f32.mrb[18].mxu1 }
 0x356   :  { %1696 = vst.msk [vmem:[%s2903_s6 + $0x38] sm:$0xff] %vm1115_vm1, %v2039_v2  ;;  %v1660_v5 = vpop.f32.mrb[19].mxu1 }
 0x357   :  { %1695 = vst.msk [vmem:[%s2903_s6 + $0x30] sm:$0xff] %vm1115_vm1, %v1660_v5 }
 0x35a   :  { %v2033_v10 = vpop.f32.mrb[28].mxu0 }
 0x35b   :  { %1692 = vst.msk [vmem:[%s2903_s6 + $0x18] sm:$0xff] %vm1115_vm1, %v2033_v10  ;;  %v1640_v16 = vpop.f32.mrb[29].mxu0  ;;  %v2042_v21 = vpop.f32.mrb[32].mxu1 }
 0x35c   :  { %1691 = vst.msk [vmem:[%s2903_s6 + $0x10] sm:$0xff] %vm1115_vm1, %v1640_v16  ;;  %1698 = vst.msk [vmem:[%s2903_s6 + $0x48] sm:$0xff] %vm1115_vm1, %v2042_v21  ;;  %v1670_v26 = vpop.f32.mrb[33].mxu1 }
 0x35d   :  { %1697 = vst.msk [vmem:[%s2903_s6 + $0x40] sm:$0xff] %vm1115_vm1, %v1670_v26 }
 0x362   :  { %v2036_v32 = vpop.f32.mrb[30].mxu0 }
 0x363   :  { %1694 = vst.msk [vmem:[%s2903_s6 + $0x28] sm:$0xff] %vm1115_vm1, %v2036_v32  ;;  %v1650_v37 = vpop.f32.mrb[31].mxu0  ;;  %v2045_v42 = vpop.f32.mrb[34].mxu1 }
 0x364   :  { %1693 = vst.msk [vmem:[%s2903_s6 + $0x20] sm:$0xff] %vm1115_vm1, %v1650_v37  ;;  %1700 = vst.msk [vmem:[%s2903_s6 + $0x58] sm:$0xff] %vm1115_vm1, %v2045_v42  ;;  %v1680_v8 = vpop.f32.mrb[35].mxu1 }
 0x365   :  { %1699 = vst.msk [vmem:[%s2903_s6 + $0x50] sm:$0xff] %vm1115_vm1, %v1680_v8 }
 0x366   :  { %2459 = dma.done.wait [#allocation4], 128  }
 0x367   :  { %2460 = vsyncadd [#allocation4], 4294967168 }
 0x368   :  { %1722 = vsyncpa [#allocation3], 1 }
 0x369   :  { %1723 = vsyncpa [#allocation6], 1 }
 0x36a   :  { %1724 = vsyncpa [#allocation4], 1 }

</bundles_post_ra>
